<compile_context>
chip_gen: v6e
topology: v6e:2x2x1
jax: 0.10.0
libtpu: 0.0.40
codegen_flags: <defaults>
</compile_context>

<pallas_src>
import functools

import jax
import jax.numpy as jnp
from jax.experimental import pallas as pl
from jax.experimental.pallas import tpu as pltpu


def _layernorm_kernel(x_ref, gamma_ref, beta_ref, o_ref, *, eps, true_hidden):
    # x_ref: (row_tile, hidden_padded); gamma/beta: (1, hidden_padded) already f32.
    x = x_ref[...].astype(jnp.float32)
    hp = x.shape[-1]
    inv_h = 1.0 / float(true_hidden)

    # Padded lanes (if any) are zero, so the raw sum over all lanes is exact.
    mean = jnp.sum(x, axis=-1, keepdims=True) * inv_h
    xc = x - mean                     # bound once; reused for var and normalize
    if true_hidden != hp:
        lane = jax.lax.broadcasted_iota(jnp.int32, (1, hp), 1)
        xc = jnp.where(lane < true_hidden, xc, 0.0)
    var = jnp.sum(xc * xc, axis=-1, keepdims=True) * inv_h   # ddof=0 (unbiased=False)
    inv_std = jax.lax.rsqrt(var + eps)
    o_ref[...] = (gamma_ref[...] * (xc * inv_std) + beta_ref[...]).astype(o_ref.dtype)


def _generation_params():
    """Generation-aware tiling knobs keyed off physical VMEM capacity."""
    try:
        vmem_cap = int(pltpu.get_tpu_info().vmem_capacity_bytes)
    except Exception:
        vmem_cap = 64 << 20  # conservative fallback (v7x-like)
    if vmem_cap <= (64 << 20) + (1 << 20):
        # v7x-class: 64 MiB VMEM per TC, 2 TCs share the "parallel" grid axis.
        return {"vmem_cap_bytes": 38 << 20, "min_grid_steps": 8}
    # v5e / v6e: 128 MiB VMEM, single TC -> fewer, larger steps.
    return {"vmem_cap_bytes": 72 << 20, "min_grid_steps": 4}


def _vmem_bytes_per_element(itemsize):
    # Double-buffered input + output blocks (input dtype) plus ~3 live f32
    # intermediates from the in-kernel upcast (x, xc, pre-cast output).
    return 4 * itemsize + 3 * 4


def _choose_row_tile(rows, hidden_padded, itemsize, *, vmem_budget_bytes, min_grid_steps):
    """Largest row tile that (a) fits the generation's VMEM budget counting the f32
    upcast intermediates, (b) keeps >= min_grid_steps grid steps when rows allow it
    (pipelining + v7x dual-TC), and (c) is a multiple of the dtype sublane packing."""
    sublane = 8 * max(1, 4 // max(1, itemsize))      # 8 f32 / 16 bf16 / 32 int8-fp8
    per_elem = _vmem_bytes_per_element(itemsize)
    max_elems = max(1, int(vmem_budget_bytes * 0.85) // per_elem)
    tile = max(sublane, max_elems // max(1, hidden_padded))
    # Never collapse to a single grid step when there are enough rows: grid=1 kills
    # double-buffering and leaves the second v7x TensorCore idle.
    if rows >= min_grid_steps * sublane:
        tile = min(tile, pl.cdiv(rows, min_grid_steps))
    tile = max(sublane, (tile // sublane) * sublane)
    return min(tile, rows)


def layer_norm(x, gamma, beta, eps=1e-5, row_tile=None):
    """LayerNorm over the last axis of x (any leading shape)."""
    orig_shape = x.shape
    hidden = orig_shape[-1]
    rows = 1
    for d in orig_shape[:-1]:
        rows *= int(d)
    rows = max(rows, 1)

    itemsize = jnp.dtype(x.dtype).itemsize
    gen = _generation_params()

    # Lane-dense padding: pad hidden up to a multiple of 128 so loads/stores are
    # unmasked; padded lanes are zero and the kernel divides by the true hidden.
    hp = hidden if hidden % 128 == 0 else ((hidden + 127) // 128) * 128

    x2 = x.reshape(rows, hidden)
    gamma2 = gamma.astype(jnp.float32).reshape(1, hidden)
    beta2 = beta.astype(jnp.float32).reshape(1, hidden)
    if hp != hidden:
        pad = ((0, 0), (0, hp - hidden))
        x2 = jnp.pad(x2, pad)
        gamma2 = jnp.pad(gamma2, pad)
        beta2 = jnp.pad(beta2, pad)

    if row_tile is None:
        row_tile = _choose_row_tile(
            rows, hp, itemsize,
            vmem_budget_bytes=gen["vmem_cap_bytes"],
            min_grid_steps=gen["min_grid_steps"])
    row_tile = max(1, min(int(row_tile), rows))
    grid = (pl.cdiv(rows, row_tile),)

    # Scoped VMEM: actual double-buffered blocks + f32 working set + margin,
    # clamped to the generation cap (v7x physical VMEM is only 64 MiB per TC).
    vmem_need = row_tile * hp * _vmem_bytes_per_element(itemsize) + 4 * hp * 4 + (2 << 20)
    vmem_limit = int(min(gen["vmem_cap_bytes"], max(16 << 20, vmem_need)))

    # Advisory cost estimate: this call is purely bandwidth-bound.
    cost = pl.CostEstimate(
        flops=8 * rows * hidden,
        transcendentals=rows,
        bytes_accessed=2 * rows * hidden * itemsize + 2 * hidden * 4,
    )

    out = pl.pallas_call(
        functools.partial(_layernorm_kernel, eps=eps, true_hidden=hidden),
        out_shape=jax.ShapeDtypeStruct((rows, hp), x.dtype),
        grid_spec=pltpu.PrefetchScalarGridSpec(
            num_scalar_prefetch=0,
            grid=grid,
            in_specs=[
                pl.BlockSpec((row_tile, hp), lambda i: (i, 0)),
                pl.BlockSpec((1, hp), lambda i: (0, 0)),
                pl.BlockSpec((1, hp), lambda i: (0, 0)),
            ],
            out_specs=pl.BlockSpec((row_tile, hp), lambda i: (i, 0)),
        ),
        compiler_params=pltpu.CompilerParams(
            dimension_semantics=("parallel",),
            vmem_limit_bytes=vmem_limit,
        ),
        cost_estimate=cost,
    )(x2, gamma2, beta2)

    if hp != hidden:
        out = out[:, :hidden]
    return out.reshape(orig_shape)


def _reference(x, gamma, beta, eps):
    x32 = x.astype(jnp.float32)
    mean = jnp.mean(x32, axis=-1, keepdims=True)
    var = jnp.mean((x32 - mean) ** 2, axis=-1, keepdims=True)
    return gamma.astype(jnp.float32) * ((x32 - mean) / jnp.sqrt(var + eps)) + beta.astype(jnp.float32)


if __name__ == "__main__":
    key = jax.random.PRNGKey(0)

    # Main case: lane-dense hidden (multiple of 128), auto row_tile.
    batch, seq, hidden = 2, 8, 128
    x = jax.random.normal(key, (batch, seq, hidden), dtype=jnp.float32)
    gamma = jnp.ones((hidden,), dtype=jnp.float32)   # torch init: ones
    beta = jnp.zeros((hidden,), dtype=jnp.float32)   # torch init: zeros
    out = layer_norm(x, gamma, beta, eps=1e-5)
    jax.block_until_ready(out)
    assert jnp.allclose(out, _reference(x, gamma, beta, 1e-5), atol=1e-5, rtol=1e-5)

    # Multi-step grid coverage: explicit smaller row_tile -> several grid steps.
    key2 = jax.random.PRNGKey(1)
    x2 = jax.random.normal(key2, (2, 32, 128), dtype=jnp.float32)
    out2 = layer_norm(x2, gamma, beta, eps=1e-5, row_tile=16)
    jax.block_until_ready(out2)
    assert jnp.allclose(out2, _reference(x2, gamma, beta, 1e-5), atol=1e-5, rtol=1e-5)

    # Small, non-128-multiple hidden: exercised via the lane-dense padding path.
    key3 = jax.random.PRNGKey(2)
    h3 = 32
    x3 = jax.random.normal(key3, (2, 8, h3), dtype=jnp.float32)
    g3 = jnp.ones((h3,), dtype=jnp.float32)
    b3 = jnp.zeros((h3,), dtype=jnp.float32)
    out3 = layer_norm(x3, g3, b3, eps=1e-5)
    jax.block_until_ready(out3)
    assert jnp.allclose(out3, _reference(x3, g3, b3, 1e-5), atol=1e-5, rtol=1e-5)

    # bf16 input: exercises sublane packing (row_tile multiple of 16) and the
    # f32-equivalent VMEM budgeting; auto row_tile splits rows into >=4 steps.
    key4 = jax.random.PRNGKey(3)
    h4 = 256
    x4 = jax.random.normal(key4, (4, 64, h4), dtype=jnp.bfloat16)
    g4 = jnp.ones((h4,), dtype=jnp.bfloat16)
    b4 = jnp.zeros((h4,), dtype=jnp.bfloat16)
    out4 = layer_norm(x4, g4, b4, eps=1e-5)
    jax.block_until_ready(out4)
    assert jnp.allclose(out4.astype(jnp.float32), _reference(x4, g4, b4, 1e-5),
                        atol=3e-2, rtol=3e-2)

    print("KERNEL_OK")
</pallas_src>

<mosaic_0001>
module attributes {stable_mosaic.version = 11 : i64} {
  func.func @_layernorm_kernel(%arg0: i32, %arg1: memref<16x128xf32, #tpu.memory_space<vmem>>, %arg2: memref<1x128xf32, #tpu.memory_space<vmem>>, %arg3: memref<1x128xf32, #tpu.memory_space<vmem>>, %arg4: memref<16x128xf32, #tpu.memory_space<vmem>>) attributes {dimension_semantics = [#tpu.dimension_semantics<parallel>], iteration_bounds = array<i64: 1>, scalar_prefetch = 0 : i64, scratch_operands = 0 : i64, tpu.core_type = #tpu.core_type<tc>, window_params = [{transform_indices = @transform_0, window_bounds = array<i64: 16, 128>}, {pipeline_mode = #tpu.pipeline_mode<synchronous>, transform_indices = @transform_1, window_bounds = array<i64: 1, 128>}, {pipeline_mode = #tpu.pipeline_mode<synchronous>, transform_indices = @transform_2, window_bounds = array<i64: 1, 128>}, {transform_indices = @transform_3, window_bounds = array<i64: 16, 128>}]} {
    %c0 = arith.constant 0 : index
    %c0_0 = arith.constant 0 : index
    %0 = vector.load %arg1[%c0, %c0_0] : memref<16x128xf32, #tpu.memory_space<vmem>>, vector<16x128xf32>
    %cst = arith.constant dense<0.000000e+00> : vector<16xf32>
    %1 = vector.multi_reduction <add>, %0, %cst [1] : vector<16x128xf32> to vector<16xf32>
    %2 = vector.shape_cast %1 : vector<16xf32> to vector<16x1xf32>
    %cst_1 = arith.constant 7.812500e-03 : f32
    %3 = vector.broadcast %cst_1 : f32 to vector<16x1xf32>
    %4 = arith.mulf %2, %3 : vector<16x1xf32>
    %5 = vector.broadcast %4 : vector<16x1xf32> to vector<16x128xf32>
    %6 = arith.subf %0, %5 : vector<16x128xf32>
    %7 = arith.mulf %6, %6 : vector<16x128xf32>
    %cst_2 = arith.constant dense<0.000000e+00> : vector<16xf32>
    %8 = vector.multi_reduction <add>, %7, %cst_2 [1] : vector<16x128xf32> to vector<16xf32>
    %9 = vector.shape_cast %8 : vector<16xf32> to vector<16x1xf32>
    %cst_3 = arith.constant 7.812500e-03 : f32
    %10 = vector.broadcast %cst_3 : f32 to vector<16x1xf32>
    %11 = arith.mulf %9, %10 : vector<16x1xf32>
    %cst_4 = arith.constant 9.99999974E-6 : f32
    %12 = vector.broadcast %cst_4 : f32 to vector<16x1xf32>
    %13 = arith.addf %11, %12 : vector<16x1xf32>
    %14 = math.rsqrt %13 : vector<16x1xf32>
    %c0_5 = arith.constant 0 : index
    %c0_6 = arith.constant 0 : index
    %15 = vector.load %arg2[%c0_5, %c0_6] : memref<1x128xf32, #tpu.memory_space<vmem>>, vector<1x128xf32>
    %16 = vector.broadcast %14 : vector<16x1xf32> to vector<16x128xf32>
    %17 = arith.mulf %6, %16 : vector<16x128xf32>
    %18 = vector.broadcast %15 : vector<1x128xf32> to vector<16x128xf32>
    %19 = arith.mulf %18, %17 : vector<16x128xf32>
    %c0_7 = arith.constant 0 : index
    %c0_8 = arith.constant 0 : index
    %20 = vector.load %arg3[%c0_7, %c0_8] : memref<1x128xf32, #tpu.memory_space<vmem>>, vector<1x128xf32>
    %21 = vector.broadcast %20 : vector<1x128xf32> to vector<16x128xf32>
    %22 = arith.addf %19, %21 : vector<16x128xf32>
    %c0_9 = arith.constant 0 : index
    %c0_10 = arith.constant 0 : index
    %23 = vector.load %arg4[%c0_9, %c0_10] : memref<16x128xf32, #tpu.memory_space<vmem>>, vector<16x128xf32>
    tpu.vector_store %arg4[%c0_9, %c0_10], %22 {strides = array<i32>} : memref<16x128xf32, #tpu.memory_space<vmem>>, vector<16x128xf32>,
    return
  }
  func.func @transform_0(%arg0: i32) -> (i32, i32) {
    %c0_i32 = arith.constant 0 : i32
    %c0_i32_0 = arith.constant 0 : i32
    return %arg0, %c0_i32 : i32, i32
  }
  func.func @transform_1(%arg0: i32) -> (i32, i32) {
    %c0_i32 = arith.constant 0 : i32
    %c0_i32_0 = arith.constant 0 : i32
    %c0_i32_1 = arith.constant 0 : i32
    return %c0_i32, %c0_i32_0 : i32, i32
  }
  func.func @transform_2(%arg0: i32) -> (i32, i32) {
    %c0_i32 = arith.constant 0 : i32
    %c0_i32_0 = arith.constant 0 : i32
    %c0_i32_1 = arith.constant 0 : i32
    return %c0_i32, %c0_i32_0 : i32, i32
  }
  func.func @transform_3(%arg0: i32) -> (i32, i32) {
    %c0_i32 = arith.constant 0 : i32
    %c0_i32_0 = arith.constant 0 : i32
    return %arg0, %c0_i32 : i32, i32
  }
}

</mosaic_0001>

<bundles_post_ra>
// kernel: tpu_custom_call.1
= control target key start
LH: loop header
LB: loop body
LE: loop exit
PB: predicated region body
PF: predicated region fallthrough
CT: control target
= control target key end

     0   :  { %8 = vsyncpa [#allocation3], 0  ;;  %s186_s0 = inlined_call_operand.hbm [shape: f32[16,128], index: 0, kind: input, shape index: {}]   ;;  %s187_s1 = inlined_call_operand.vmem [shape: f32[1,128], index: 1, kind: input, shape index: {}]   ;;  %s188_s2 = inlined_call_operand.vmem [shape: f32[1,128], index: 2, kind: input, shape index: {}]   ;;  %s189_s3 = inlined_call_operand.hbm [shape: f32[16,128], index: 3, kind: output, shape index: {}]  }
   0x1   :  { %9 = vsyncpa [#allocation4], 0  ;;  %s144_s12 = smov [#allocation2]  }
   0x2   :  { %s15_s13 = sshll.u32 %s144_s12, 4  ;;  %s16_s13 = int_to_ptr.vmem [resolvable:$true] %s15_s13 }
   0x3   :  { %s108_s14 = scalar_lea.vmem %s16_s13, 256  ;;  %p113_p1 = scmp.lt.s32.totalorder %s16_s13, %s16_s13 }
   0x4   :  { %p109_p0 = scmp.ne.s32.totalorder %s16_s13, %s108_s14  ;;  %p114_p2 = scmp.lt.s32.totalorder %s108_s14, %s108_s14 }
   0x6   :  { %p115_p3 = por %p114_p2, %p113_p1 }
   0x8   :  { %p116_p4 = pnand %p115_p3, %p109_p0 }
   0xa   :  { %119 = shalt.err (!%p116_p4)
}
   0xb   :  { %s145_s15 = smov 128   ;;  %s146_s16 = smov 8  }
   0xc   :  { %21 = dma.hbm_to_vmem [thread:$0]  %s186_s0, 256, %s16_s13, [#allocation3], %s145_s15, %s145_s15, %s146_s16  }
   0xd   :  { %140 = dma.done.wait [#allocation3], 256  }
   0xe   :  { %141 = vsyncadd [#allocation3], 4294967040  ;;  %v29_v0 = vld [vmem:[#allocation2] sm:$0xff]  ;;  %v30_v1 = vld [vmem:[#allocation2 + $0x8] sm:$0xff]  ;;  %s147_s22 = smov [#allocation5]  }
   0xf   :  { %31 = vadd.xlane.f32.xlu0 %v29_v0  ;;  %v90_v17 = vld [vmem:[%s187_s1] ss:$0 sm:$0xff]  ;;  %s78_s23 = sshll.u32 %s147_s22, 4  ;;  %s79_s23 = int_to_ptr.vmem [resolvable:$true] %s78_s23 }
  0x10   :  { %v91_v19 = vld [vmem:[%s188_s2] ss:$0 sm:$0xff]  ;;  %s120_s24 = scalar_lea.vmem %s79_s23, 256  ;;  %p125_p6 = scmp.lt.s32.totalorder %s79_s23, %s79_s23 }
  0x11   :  { %p121_p5 = scmp.ne.s32.totalorder %s79_s23, %s120_s24  ;;  %p126_p7 = scmp.lt.s32.totalorder %s120_s24, %s120_s24 }
  0x13   :  { %33 = vadd.xlane.f32.xlu0 %v30_v1  ;;  %p127_p8 = por %p126_p7, %p125_p6 }
  0x15   :  { %p128_p9 = pnand %p127_p8, %p121_p5 }
  0x98   :  { %v32_v2 = vpop.xlane.xlu0 %31 }
  0x99   :  { %v35_v3 = vmul.f32 0.0078125, %v32_v2 }
  0x9b   :  { %v37_v4 = vsub.f32 %v29_v0, %v35_v3 }
  0x9c   :  { %v34_v5 = vpop.xlane.xlu0 %33 }
  0x9d   :  { %v36_v6 = vmul.f32 0.0078125, %v34_v5  ;;  %v39_v7 = vmul.f32 %v37_v4, %v37_v4 }
  0x9f   :  { %v38_v8 = vsub.f32 %v30_v1, %v36_v6  ;;  %41 = vadd.xlane.f32.xlu1 %v39_v7 }
  0xa1   :  { %v40_v9 = vmul.f32 %v38_v8, %v38_v8 }
  0xa3   :  { %43 = vadd.xlane.f32.xlu1 %v40_v9 }
 0x128   :  { %v42_v10 = vpop.xlane.xlu1 %41 }
 0x129   :  { %v45_v11 = vmul.f32 0.0078125, %v42_v10 }
 0x12b   :  { %v47_v12 = vadd.f32 1e-05, %v45_v11 }
 0x12c   :  { %v44_v13 = vpop.xlane.xlu1 %43 }
 0x12d   :  { %96 = vrsqrt.f32 %v47_v12  ;;  %v46_v14 = vmul.f32 0.0078125, %v44_v13 }
 0x12f   :  { %v48_v15 = vadd.f32 1e-05, %v46_v14 }
 0x131   :  { %98 = vrsqrt.f32 %v48_v15 }
 0x13a   :  { %v97_v16 = vpop.eup %96 }
 0x13b   :  { %v52_v18 = vmul.f32 %v97_v16, %v37_v4 }
 0x13d   :  { %v60_v20 = vmul.f32 %v90_v17, %v52_v18 }
 0x13e   :  { %v99_v21 = vpop.eup %98 }
 0x13f   :  { %v53_v22 = vmul.f32 %v99_v21, %v38_v8  ;;  %v69_v23 = vadd.f32 %v91_v19, %v60_v20 }
 0x141   :  { %v61_v24 = vmul.f32 %v90_v17, %v53_v22  ;;  %71 = vst [vmem:[#allocation5] sm:$0xff] %v69_v23 }
 0x143   :  { %v70_v25 = vadd.f32 %v91_v19, %v61_v24 }
 0x145   :  { %72 = vst [vmem:[#allocation5 + $0x8] sm:$0xff] %v70_v25 }
 0x146   :  { %131 = shalt.err (!%p128_p9)
}
 0x147   :  { %84 = dma.vmem_to_hbm [thread:$0]  %s79_s23, 256, %s189_s3, [#allocation4], %s145_s15, %s145_s15, %s146_s16  }
 0x148   :  { %142 = dma.done.wait [#allocation4], 256  }
 0x149   :  { %143 = vsyncadd [#allocation4], 4294967040 }
 0x14a   :  { %88 = vsyncpa [#allocation3], 1 }
 0x14b   :  { %89 = vsyncpa [#allocation4], 1 }

</bundles_post_ra>
